<compile_context>
chip_gen: v5e
topology: v5e:2x2
jax: 0.10.0
libtpu: 0.0.40
codegen_flags: <defaults>
</compile_context>

<pallas_src>
import functools

import jax
import jax.numpy as jnp
from jax.experimental import pallas as pl
from jax.experimental.pallas import tpu as pltpu


# ----------------------------- config -----------------------------
class BambaConfig:
    vocab_size = 256
    hidden_size = 128
    intermediate_size = 256          # MLP intermediate
    num_attention_heads = 4
    num_key_value_heads = 2
    rms_norm_eps = 1e-5
    rope_theta = 10000.0
    max_position_embeddings = 8192
    hidden_act = "silu"
    # mamba mixer
    mamba_expand = 2
    mamba_d_state = 64
    mamba_d_conv = 4
    mamba_n_groups = 1
    mamba_n_heads = 8
    mamba_d_head = 32
    mamba_conv_bias = True
    mamba_proj_bias = False
    layers_block_type = ("mamba", "attention")

    @property
    def head_dim(self):
        return self.hidden_size // self.num_attention_heads

    @property
    def mamba_d_inner(self):
        return self.mamba_expand * self.hidden_size


# ----------------------------- fused norm + projection kernels -----------------------------
def _norm_linear_nores_kernel(eps, x_ref, lnw_ref, w_ref, out_ref):
    h = x_ref[...].astype(jnp.float32)
    var = jnp.mean(h * h, axis=-1, keepdims=True)
    n = h * jax.lax.rsqrt(var + eps) * lnw_ref[...]
    out_ref[...] = jnp.dot(n.astype(jnp.bfloat16), w_ref[...],
                           preferred_element_type=jnp.float32).astype(out_ref.dtype)


def _norm_linear_kernel(eps, x_ref, res_ref, lnw_ref, w_ref, out_ref, newres_ref):
    h = x_ref[...].astype(jnp.float32) + res_ref[...]
    newres_ref[...] = h
    var = jnp.mean(h * h, axis=-1, keepdims=True)
    n = h * jax.lax.rsqrt(var + eps) * lnw_ref[...]
    out_ref[...] = jnp.dot(n.astype(jnp.bfloat16), w_ref[...],
                           preferred_element_type=jnp.float32).astype(out_ref.dtype)


def fused_norm_linear(x, residual, ln_w, w_bf16, eps, tm):
    """vLLM RMSNorm(+residual add) fused with the following projection matmul.

    Returns (x_normed @ W in bf16, new_residual in f32)."""
    T, K = x.shape
    N = w_bf16.shape[1]
    grid = (T // tm,)
    lnw = ln_w.reshape(1, -1)
    cp = pltpu.CompilerParams(dimension_semantics=("parallel",))
    if residual is None:
        out = pl.pallas_call(
            functools.partial(_norm_linear_nores_kernel, eps),
            out_shape=jax.ShapeDtypeStruct((T, N), jnp.bfloat16),
            grid_spec=pltpu.PrefetchScalarGridSpec(
                num_scalar_prefetch=0, grid=grid,
                in_specs=[pl.BlockSpec((tm, K), lambda i: (i, 0)),
                          pl.BlockSpec((1, K), lambda i: (0, 0)),
                          pl.BlockSpec((K, N), lambda i: (0, 0))],
                out_specs=pl.BlockSpec((tm, N), lambda i: (i, 0))),
            compiler_params=cp,
        )(x, lnw, w_bf16)
        return out, x
    out, newres = pl.pallas_call(
        functools.partial(_norm_linear_kernel, eps),
        out_shape=(jax.ShapeDtypeStruct((T, N), jnp.bfloat16),
                   jax.ShapeDtypeStruct((T, K), jnp.float32)),
        grid_spec=pltpu.PrefetchScalarGridSpec(
            num_scalar_prefetch=0, grid=grid,
            in_specs=[pl.BlockSpec((tm, K), lambda i: (i, 0)),
                      pl.BlockSpec((tm, K), lambda i: (i, 0)),
                      pl.BlockSpec((1, K), lambda i: (0, 0)),
                      pl.BlockSpec((K, N), lambda i: (0, 0))],
            out_specs=(pl.BlockSpec((tm, N), lambda i: (i, 0)),
                       pl.BlockSpec((tm, K), lambda i: (i, 0)))),
        compiler_params=cp,
    )(x, residual, lnw, w_bf16)
    return out, newres


def _proj_norm_mlp_kernel(eps, xa_ref, wp_ref, res_ref, lnw_ref, wgu_ref, wd_ref,
                          out_ref, newres_ref):
    # o_proj / out_proj matmul + residual add + pre_ff RMSNorm + SwiGLU MLP, all fused.
    proj = jnp.dot(xa_ref[...].astype(jnp.bfloat16), wp_ref[...],
                   preferred_element_type=jnp.float32)
    h = proj + res_ref[...]
    newres_ref[...] = h
    var = jnp.mean(h * h, axis=-1, keepdims=True)
    n = h * jax.lax.rsqrt(var + eps) * lnw_ref[...]
    gu = jnp.dot(n.astype(jnp.bfloat16), wgu_ref[...],
                 preferred_element_type=jnp.float32)
    inter = wd_ref.shape[0]
    gate = gu[:, :inter]
    up = gu[:, inter:]
    act = gate * jax.nn.sigmoid(gate) * up
    out_ref[...] = jnp.dot(act.astype(jnp.bfloat16), wd_ref[...],
                           preferred_element_type=jnp.float32).astype(out_ref.dtype)


def fused_proj_norm_mlp(xa, w_proj, residual, ln_w, w_gu, w_d, eps, tm):
    T, Ka = xa.shape
    D = w_proj.shape[1]
    inter = w_d.shape[0]
    grid = (T // tm,)
    out, newres = pl.pallas_call(
        functools.partial(_proj_norm_mlp_kernel, eps),
        out_shape=(jax.ShapeDtypeStruct((T, D), jnp.bfloat16),
                   jax.ShapeDtypeStruct((T, D), jnp.float32)),
        grid_spec=pltpu.PrefetchScalarGridSpec(
            num_scalar_prefetch=0, grid=grid,
            in_specs=[pl.BlockSpec((tm, Ka), lambda i: (i, 0)),
                      pl.BlockSpec((Ka, D), lambda i: (0, 0)),
                      pl.BlockSpec((tm, D), lambda i: (i, 0)),
                      pl.BlockSpec((1, D), lambda i: (0, 0)),
                      pl.BlockSpec((D, 2 * inter), lambda i: (0, 0)),
                      pl.BlockSpec((inter, D), lambda i: (0, 0))],
            out_specs=(pl.BlockSpec((tm, D), lambda i: (i, 0)),
                       pl.BlockSpec((tm, D), lambda i: (i, 0)))),
        compiler_params=pltpu.CompilerParams(dimension_semantics=("parallel",)),
    )(xa, w_proj, residual, ln_w.reshape(1, -1), w_gu, w_d)
    return out, newres


def _final_norm_kernel(eps, x_ref, res_ref, w_ref, o_ref):
    h = x_ref[...].astype(jnp.float32) + res_ref[...]
    var = jnp.mean(h * h, axis=-1, keepdims=True)
    o_ref[...] = h * jax.lax.rsqrt(var + eps) * w_ref[...]


def final_rmsnorm(x, residual, weight, eps, tm):
    T, D = x.shape
    return pl.pallas_call(
        functools.partial(_final_norm_kernel, eps),
        out_shape=jax.ShapeDtypeStruct((T, D), jnp.float32),
        grid_spec=pltpu.PrefetchScalarGridSpec(
            num_scalar_prefetch=0, grid=(T // tm,),
            in_specs=[pl.BlockSpec((tm, D), lambda i: (i, 0)),
                      pl.BlockSpec((tm, D), lambda i: (i, 0)),
                      pl.BlockSpec((1, D), lambda i: (0, 0))],
            out_specs=pl.BlockSpec((tm, D), lambda i: (i, 0))),
        compiler_params=pltpu.CompilerParams(dimension_semantics=("parallel",)),
    )(x, residual, weight.reshape(1, -1))


# ----------------------------- fused RoPE (neox) + bf16 cast + qkv split -----------------------------
def _rope_kernel(H, KH, Dh, qkv_ref, cosf_ref, sinsg_ref, q_ref, k_ref, v_ref):
    # qkv_ref: [tm, (H+2KH)*Dh]; cosf/sinsg: [tm, Dh] f32
    half = Dh // 2
    cosf = cosf_ref[...]
    sinsg = sinsg_ref[...]
    q_size = H * Dh
    kv_size = KH * Dh

    def rot(x):
        x = x.astype(jnp.float32)
        xs = jnp.concatenate([x[:, half:], x[:, :half]], axis=1)  # swap halves
        return x * cosf + xs * sinsg

    for h in range(H):
        c0 = h * Dh
        q_ref[:, c0:c0 + Dh] = rot(qkv_ref[:, c0:c0 + Dh]).astype(q_ref.dtype)
    for h in range(KH):
        src = q_size + h * Dh
        k_ref[:, h * Dh:(h + 1) * Dh] = rot(qkv_ref[:, src:src + Dh]).astype(k_ref.dtype)
    v_ref[...] = qkv_ref[:, q_size + kv_size:q_size + 2 * kv_size].astype(v_ref.dtype)


def rope_qkv(qkv, cos_full, sin_signed, H, KH, Dh, tm):
    T, QKV = qkv.shape
    q_size, kv_size = H * Dh, KH * Dh
    return pl.pallas_call(
        functools.partial(_rope_kernel, H, KH, Dh),
        out_shape=(jax.ShapeDtypeStruct((T, q_size), jnp.bfloat16),
                   jax.ShapeDtypeStruct((T, kv_size), jnp.bfloat16),
                   jax.ShapeDtypeStruct((T, kv_size), jnp.bfloat16)),
        grid_spec=pltpu.PrefetchScalarGridSpec(
            num_scalar_prefetch=0, grid=(T // tm,),
            in_specs=[pl.BlockSpec((tm, QKV), lambda i: (i, 0)),
                      pl.BlockSpec((tm, Dh), lambda i: (i, 0)),
                      pl.BlockSpec((tm, Dh), lambda i: (i, 0))],
            out_specs=(pl.BlockSpec((tm, q_size), lambda i: (i, 0)),
                       pl.BlockSpec((tm, kv_size), lambda i: (i, 0)),
                       pl.BlockSpec((tm, kv_size), lambda i: (i, 0)))),
        compiler_params=pltpu.CompilerParams(dimension_semantics=("parallel",)),
    )(qkv, cos_full, sin_signed)


def rope_tables(positions, head_dim, theta):
    inv_freq = 1.0 / (theta ** (jnp.arange(0, head_dim, 2, dtype=jnp.float32) / head_dim))
    ang = positions.astype(jnp.float32)[:, None] * inv_freq[None, :]       # [T, Dh/2]
    cos = jnp.cos(ang)
    sin = jnp.sin(ang)
    cos_full = jnp.concatenate([cos, cos], axis=-1)                         # [T, Dh]
    sin_signed = jnp.concatenate([-sin, sin], axis=-1)                      # [T, Dh]
    return cos_full, sin_signed


# ----------------------------- flash attention (lane-dense, GQA inside) -----------------------------
def _flash_attn_kernel(scale, H, KH, Dh, q_ref, k_ref, v_ref, o_ref, m_sc, l_sc, acc_sc):
    # q_ref: [tq, H*Dh] bf16 ; k_ref/v_ref: [tk, KH*Dh] bf16 ; o_ref: [tq, H*Dh] bf16
    # m_sc/l_sc: [H, tq, 1] f32 ; acc_sc: [tq, H*Dh] f32
    tq = q_ref.shape[0]
    tk = k_ref.shape[0]
    rep = H // KH
    qi = pl.program_id(0)
    kj = pl.program_id(1)
    q_start = qi * tq
    k_start = kj * tk

    @pl.when(kj == 0)
    def _init():
        m_sc[...] = jnp.full_like(m_sc, -1e30)
        l_sc[...] = jnp.zeros_like(l_sc)
        acc_sc[...] = jnp.zeros_like(acc_sc)

    def compute(masked):
        for h in range(H):
            g = h // rep
            q_h = q_ref[:, h * Dh:(h + 1) * Dh]
            k_g = k_ref[:, g * Dh:(g + 1) * Dh]
            v_g = v_ref[:, g * Dh:(g + 1) * Dh]
            s = jax.lax.dot_general(q_h, k_g, (((1,), (1,)), ((), ())),
                                    preferred_element_type=jnp.float32) * scale
            if masked:
                row = jax.lax.broadcasted_iota(jnp.int32, (tq, tk), 0)
                col = jax.lax.broadcasted_iota(jnp.int32, (tq, tk), 1)
                s = jnp.where(k_start + col <= q_start + row, s, -1e30)
            m_prev = m_sc[h]
            m_new = jnp.maximum(m_prev, jnp.max(s, axis=-1, keepdims=True))
            alpha = jnp.exp(m_prev - m_new)
            p = jnp.exp(s - m_new)
            l_sc[h] = alpha * l_sc[h] + jnp.sum(p, axis=-1, keepdims=True)
            pv = jax.lax.dot_general(p.astype(v_g.dtype), v_g, (((1,), (0,)), ((), ())),
                                     preferred_element_type=jnp.float32)
            acc_sc[:, h * Dh:(h + 1) * Dh] = alpha * acc_sc[:, h * Dh:(h + 1) * Dh] + pv
            m_sc[h] = m_new

    # fully-past kv tiles: no masking work at all
    @pl.when(k_start + tk <= q_start)
    def _full():
        compute(masked=False)

    # diagonal kv tiles: causal mask needed (fully-future tiles are skipped entirely)
    @pl.when(jnp.logical_and(k_start + tk > q_start, k_start < q_start + tq))
    def _diag():
        compute(masked=True)

    @pl.when(kj == pl.num_programs(1) - 1)
    def _finalize():
        for h in range(H):
            inv = pl.reciprocal(l_sc[h], approx=True)
            o_ref[:, h * Dh:(h + 1) * Dh] = (
                acc_sc[:, h * Dh:(h + 1) * Dh] * inv).astype(o_ref.dtype)


def flash_attention(q, k, v, H, KH, Dh, tq, tk):
    """q: [T, H*Dh] bf16, k/v: [T, KH*Dh] bf16  ->  [T, H*Dh] bf16 (causal)."""
    T = q.shape[0]
    scale = Dh ** -0.5
    grid = (T // tq, T // tk)
    return pl.pallas_call(
        functools.partial(_flash_attn_kernel, scale, H, KH, Dh),
        out_shape=jax.ShapeDtypeStruct((T, H * Dh), jnp.bfloat16),
        grid_spec=pltpu.PrefetchScalarGridSpec(
            num_scalar_prefetch=0, grid=grid,
            in_specs=[pl.BlockSpec((tq, H * Dh), lambda i, j: (i, 0)),
                      pl.BlockSpec((tk, KH * Dh), lambda i, j: (j, 0)),
                      pl.BlockSpec((tk, KH * Dh), lambda i, j: (j, 0))],
            out_specs=pl.BlockSpec((tq, H * Dh), lambda i, j: (i, 0)),
            scratch_shapes=[pltpu.VMEM((H, tq, 1), jnp.float32),
                            pltpu.VMEM((H, tq, 1), jnp.float32),
                            pltpu.VMEM((tq, H * Dh), jnp.float32)]),
        compiler_params=pltpu.CompilerParams(
            dimension_semantics=("parallel", "arbitrary")),
    )(q, k, v)


# ----------------------------- mamba: conv + scan + gated norm -----------------------------
def _conv_silu_kernel(K, xprev_ref, xcur_ref, w_ref, b_ref, o_ref):
    # xprev_ref: previous time tile (same columns), xcur_ref: current tile; both [Tt, Ct]
    # w_ref: [K, 1, Ct]; b_ref: [1, Ct]
    i = pl.program_id(0)
    Tt = xcur_ref.shape[0]
    xcur = xcur_ref[...].astype(jnp.float32)
    halo = xprev_ref[pl.ds(Tt - (K - 1), K - 1), :].astype(jnp.float32)
    halo = jnp.where(i == 0, jnp.zeros_like(halo), halo)   # causal zero state for tile 0
    ext = jnp.concatenate([halo, xcur], axis=0)            # [Tt+K-1, Ct]
    acc = b_ref[...] + xcur * w_ref[K - 1]
    for k in range(K - 1):
        acc = acc + ext[k:k + Tt, :] * w_ref[k]            # in-kernel causal taps (halo'd)
    o_ref[...] = acc * jax.nn.sigmoid(acc)


def conv_silu(proj, w, b, K, conv_dim, col_start, t_tile, c_tile=128):
    """Depthwise causal conv + SiLU reading its input columns straight out of `proj`."""
    T = proj.shape[0]
    assert conv_dim % c_tile == 0 and T % t_tile == 0 and col_start % c_tile == 0
    cb = col_start // c_tile
    return pl.pallas_call(
        functools.partial(_conv_silu_kernel, K),
        out_shape=jax.ShapeDtypeStruct((T, conv_dim), jnp.float32),
        grid_spec=pltpu.PrefetchScalarGridSpec(
            num_scalar_prefetch=0, grid=(T // t_tile, conv_dim // c_tile),
            in_specs=[pl.BlockSpec((t_tile, c_tile),
                                   lambda i, c: (jnp.maximum(i - 1, 0), c + cb)),
                      pl.BlockSpec((t_tile, c_tile), lambda i, c: (i, c + cb)),
                      pl.BlockSpec((K, 1, c_tile), lambda i, c: (0, 0, c)),
                      pl.BlockSpec((1, c_tile), lambda i, c: (0, c))],
            out_specs=pl.BlockSpec((t_tile, c_tile), lambda i, c: (i, c))),
        compiler_params=pltpu.CompilerParams(
            dimension_semantics=("parallel", "parallel")),
    )(proj, proj, w, b)


def _ssm_scan_kernel(x_ref, dt_ref, B_ref, C_ref, A_ref, D_ref, dtb_ref,
                     y_ref, state_ref, dA_ref, dtx_ref, dx_ref):
    # x_ref: [Tt,H,P]; dt_ref: [Tt,H]; B_ref/C_ref: [Tt,G,N] (G==1); A/D/dtb: [1,H]
    # y_ref: [Tt,H,P]; scratch: state [H,P,N], dA [Tt,H,1], dtx/dx [Tt,H,P]
    @pl.when(pl.program_id(0) == 0)
    def _init():
        state_ref[...] = jnp.zeros_like(state_ref)

    # vectorized per-tile precompute (softplus/exp hoisted out of the scan loop)
    z = dt_ref[...].astype(jnp.float32) + dtb_ref[...]
    dt = jnp.where(z > 30.0, z, jnp.log1p(jnp.exp(jnp.minimum(z, 30.0))))   # softplus
    dA_ref[...] = jnp.exp(dt * A_ref[...])[:, :, None]
    x = x_ref[...].astype(jnp.float32)
    dtx_ref[...] = dt[:, :, None] * x
    dx_ref[...] = D_ref[...][:, :, None] * x

    Tt = x_ref.shape[0]

    def body(t, state):
        B_t = B_ref[t]                                     # [1, N] (broadcast over H,P)
        C_t = C_ref[t]
        state = state * dA_ref[t][:, :, None] + dtx_ref[t][:, :, None] * B_t[:, None, :]
        y_ref[t] = jnp.sum(state * C_t[:, None, :], axis=-1) + dx_ref[t]
        return state

    state_ref[...] = jax.lax.fori_loop(0, Tt, body, state_ref[...], unroll=4)


def ssm_scan(xh, dt, B, C, A, D, dt_bias, cfg, t_tile):
    T = xh.shape[0]
    H, P, N = cfg.mamba_n_heads, cfg.mamba_d_head, cfg.mamba_d_state
    G = cfg.mamba_n_groups
    assert T % t_tile == 0
    assert G == 1  # TODO(synk): general n_groups>1 per-head group indexing inside the kernel
    x3 = xh.reshape(T, H, P)
    y = pl.pallas_call(
        _ssm_scan_kernel,
        out_shape=jax.ShapeDtypeStruct((T, H, P), jnp.float32),
        grid_spec=pltpu.PrefetchScalarGridSpec(
            num_scalar_prefetch=0, grid=(T // t_tile,),
            in_specs=[pl.BlockSpec((t_tile, H, P), lambda i: (i, 0, 0)),
                      pl.BlockSpec((t_tile, H), lambda i: (i, 0)),
                      pl.BlockSpec((t_tile, G, N), lambda i: (i, 0, 0)),
                      pl.BlockSpec((t_tile, G, N), lambda i: (i, 0, 0)),
                      pl.BlockSpec((1, H), lambda i: (0, 0)),
                      pl.BlockSpec((1, H), lambda i: (0, 0)),
                      pl.BlockSpec((1, H), lambda i: (0, 0))],
            out_specs=pl.BlockSpec((t_tile, H, P), lambda i: (i, 0, 0)),
            scratch_shapes=[pltpu.VMEM((H, P, N), jnp.float32),
                            pltpu.VMEM((t_tile, H, 1), jnp.float32),
                            pltpu.VMEM((t_tile, H, P), jnp.float32),
                            pltpu.VMEM((t_tile, H, P), jnp.float32)]),
        compiler_params=pltpu.CompilerParams(dimension_semantics=("arbitrary",)),
    )(x3, dt, B, C, A.reshape(1, H), D.reshape(1, H), dt_bias.reshape(1, H))
    return y.reshape(T, H * P)


def _gated_rmsnorm_kernel(eps, x_ref, g_ref, w_ref, o_ref):
    g = g_ref[...].astype(jnp.float32)
    x = x_ref[...] * (g * jax.nn.sigmoid(g))
    var = jnp.mean(x * x, axis=-1, keepdims=True)
    o_ref[...] = (x * jax.lax.rsqrt(var + eps) * w_ref[...]).astype(o_ref.dtype)


def gated_rmsnorm(x, gate_src, weight, eps, tm):
    """x: [T, I] f32, gate_src: [T, >=I] (gate in first I columns) -> [T, I] bf16."""
    T, I = x.shape
    return pl.pallas_call(
        functools.partial(_gated_rmsnorm_kernel, eps),
        out_shape=jax.ShapeDtypeStruct((T, I), jnp.bfloat16),
        grid_spec=pltpu.PrefetchScalarGridSpec(
            num_scalar_prefetch=0, grid=(T // tm,),
            in_specs=[pl.BlockSpec((tm, I), lambda i: (i, 0)),
                      pl.BlockSpec((tm, I), lambda i: (i, 0)),
                      pl.BlockSpec((1, I), lambda i: (0, 0))],
            out_specs=pl.BlockSpec((tm, I), lambda i: (i, 0))),
        compiler_params=pltpu.CompilerParams(dimension_semantics=("parallel",)),
    )(x, gate_src, weight.reshape(1, -1))


# ----------------------------- layers -----------------------------
def attention_layer(lp, x, residual, cos_full, sin_signed, cfg, tm):
    T = x.shape[0]
    H, KH, Dh = cfg.num_attention_heads, cfg.num_key_value_heads, cfg.head_dim

    qkv, residual = fused_norm_linear(x, residual, lp["input_ln_w"], lp["qkv_w"],
                                      cfg.rms_norm_eps, tm)
    q, k, v = rope_qkv(qkv, cos_full, sin_signed, H, KH, Dh, tm)

    tq = tk = T if T <= 256 else 256
    assert T % tq == 0
    attn_o = flash_attention(q, k, v, H, KH, Dh, tq, tk)             # [T, H*Dh] bf16

    out, residual = fused_proj_norm_mlp(attn_o, lp["o_w"], residual, lp["pre_ff_ln_w"],
                                        lp["gate_up_w"], lp["down_w"], cfg.rms_norm_eps, tm)
    return out, residual


def mamba_layer(lp, x, residual, cfg, tm):
    T = x.shape[0]
    I = cfg.mamba_d_inner
    G = cfg.mamba_n_groups
    N = cfg.mamba_d_state
    K = cfg.mamba_d_conv
    conv_dim = I + 2 * G * N

    proj, residual = fused_norm_linear(x, residual, lp["input_ln_w"], lp["in_proj_w"],
                                       cfg.rms_norm_eps, tm)
    dt = proj[:, I + conv_dim:]                      # [T, H] bf16 (tiny slice)

    t_conv = T if T <= 256 else 256
    xBC = conv_silu(proj, lp["conv_w"], lp["conv_b"], K, conv_dim, I, t_conv)

    xh = xBC[:, :I]                                  # [T, I]
    B = xBC[:, I:I + G * N].reshape(T, G, N)         # no head repeat in HBM
    C = xBC[:, I + G * N:].reshape(T, G, N)

    A = -jnp.exp(lp["A_log"])                        # [H]
    t_tile = T if T <= 128 else 128
    y = ssm_scan(xh, dt, B, C, A, lp["D"], lp["dt_bias"], cfg, t_tile)   # [T, I]

    # gate is read straight from the first I columns of proj (no XLA slice copy)
    y = gated_rmsnorm(y, proj, lp["mixer_norm_w"], cfg.rms_norm_eps, tm)
    out, residual = fused_proj_norm_mlp(y, lp["out_proj_w"], residual, lp["pre_ff_ln_w"],
                                        lp["gate_up_w"], lp["down_w"], cfg.rms_norm_eps, tm)
    return out, residual


def bamba_forward(params, input_ids, positions, cfg):
    T = input_ids.shape[0]
    tm = T if T <= 512 else 512
    assert T % tm == 0
    x = params["embed"][input_ids]                   # embedding gather (glue)
    cos_full, sin_signed = rope_tables(positions, cfg.head_dim, cfg.rope_theta)
    residual = None
    for i, ltype in enumerate(cfg.layers_block_type):
        lp = params["layers"][i]
        if ltype == "attention":
            x, residual = attention_layer(lp, x, residual, cos_full, sin_signed, cfg, tm)
        else:
            x, residual = mamba_layer(lp, x, residual, cfg, tm)
    return final_rmsnorm(x, residual, params["final_ln_w"], cfg.rms_norm_eps, tm)


# ----------------------------- deterministic param init -----------------------------
def init_params(cfg, key):
    def nrm(k, shape, scale=0.05):
        return jax.random.normal(k, shape, jnp.float32) * scale

    def nrm_bf16(k, shape, scale=0.05):
        return nrm(k, shape, scale).astype(jnp.bfloat16)   # bf16 weights for MXU matmuls

    keys = iter(jax.random.split(key, 64))
    params = {
        "embed": nrm(next(keys), (cfg.vocab_size, cfg.hidden_size)),
        "final_ln_w": jnp.ones((cfg.hidden_size,), jnp.float32),
        "layers": [],
    }
    for ltype in cfg.layers_block_type:
        lp = {
            "input_ln_w": jnp.ones((cfg.hidden_size,), jnp.float32),
            "pre_ff_ln_w": jnp.ones((cfg.hidden_size,), jnp.float32),
            "gate_up_w": nrm_bf16(next(keys), (cfg.hidden_size, 2 * cfg.intermediate_size)),
            "down_w": nrm_bf16(next(keys), (cfg.intermediate_size, cfg.hidden_size)),
        }
        if ltype == "attention":
            qkv_out = (cfg.num_attention_heads + 2 * cfg.num_key_value_heads) * cfg.head_dim
            lp["qkv_w"] = nrm_bf16(next(keys), (cfg.hidden_size, qkv_out))
            lp["o_w"] = nrm_bf16(next(keys),
                                 (cfg.num_attention_heads * cfg.head_dim, cfg.hidden_size))
        else:
            I = cfg.mamba_d_inner
            conv_dim = I + 2 * cfg.mamba_n_groups * cfg.mamba_d_state
            in_proj_out = 2 * I + 2 * cfg.mamba_n_groups * cfg.mamba_d_state + cfg.mamba_n_heads
            lp["in_proj_w"] = nrm_bf16(next(keys), (cfg.hidden_size, in_proj_out))
            lp["conv_w"] = nrm(next(keys), (cfg.mamba_d_conv, 1, conv_dim), 0.2)
            lp["conv_b"] = jnp.zeros((1, conv_dim), jnp.float32)
            lp["A_log"] = jnp.log(jnp.arange(1, cfg.mamba_n_heads + 1, dtype=jnp.float32))
            lp["D"] = jnp.ones((cfg.mamba_n_heads,), jnp.float32)
            # inverse-softplus of dt targets in [1e-3, 1e-1]
            lp["dt_bias"] = jnp.log(jnp.expm1(
                jnp.linspace(0.001, 0.1, cfg.mamba_n_heads, dtype=jnp.float32)))
            lp["mixer_norm_w"] = jnp.ones((I,), jnp.float32)
            lp["out_proj_w"] = nrm_bf16(next(keys), (I, cfg.hidden_size))
        params["layers"].append(lp)
    return params


# ----------------------------- main -----------------------------
if __name__ == "__main__":
    cfg = BambaConfig()
    key = jax.random.PRNGKey(0)
    pkey, ikey = jax.random.split(key)
    params = init_params(cfg, pkey)

    T = 8
    input_ids = jax.random.randint(ikey, (T,), 0, cfg.vocab_size, dtype=jnp.int32)
    positions = jnp.arange(T, dtype=jnp.int32)

    out = bamba_forward(params, input_ids, positions, cfg)
    out = jax.block_until_ready(out)

    assert out.shape == (T, cfg.hidden_size)
    assert bool(jnp.all(jnp.isfinite(out)))
    print("KERNEL_OK")
</pallas_src>

<mosaic_0001>
module attributes {stable_mosaic.version = 11 : i64} {
  func.func @_norm_linear_nores_kernel(%arg0: i32, %arg1: memref<8x128xf32, #tpu.memory_space<vmem>>, %arg2: memref<1x128xf32, #tpu.memory_space<vmem>>, %arg3: memref<128x648xbf16, #tpu.memory_space<vmem>>, %arg4: memref<8x648xbf16, #tpu.memory_space<vmem>>) attributes {dimension_semantics = [#tpu.dimension_semantics<parallel>], iteration_bounds = array<i64: 1>, scalar_prefetch = 0 : i64, scratch_operands = 0 : i64, tpu.core_type = #tpu.core_type<tc>, window_params = [{transform_indices = @transform_0, window_bounds = array<i64: 8, 128>}, {pipeline_mode = #tpu.pipeline_mode<synchronous>, transform_indices = @transform_1, window_bounds = array<i64: 1, 128>}, {pipeline_mode = #tpu.pipeline_mode<synchronous>, transform_indices = @transform_2, window_bounds = array<i64: 128, 648>}, {transform_indices = @transform_3, window_bounds = array<i64: 8, 648>}]} {
    %c0 = arith.constant 0 : index
    %c0_0 = arith.constant 0 : index
    %0 = vector.load %arg1[%c0, %c0_0] : memref<8x128xf32, #tpu.memory_space<vmem>>, vector<8x128xf32>
    %1 = arith.mulf %0, %0 : vector<8x128xf32>
    %cst = arith.constant dense<0.000000e+00> : vector<8xf32>
    %2 = vector.multi_reduction <add>, %1, %cst [1] : vector<8x128xf32> to vector<8xf32>
    %3 = vector.shape_cast %2 : vector<8xf32> to vector<8x1xf32>
    %cst_1 = arith.constant 1.280000e+02 : f32
    %4 = vector.broadcast %cst_1 : f32 to vector<8x1xf32>
    %5 = arith.divf %3, %4 : vector<8x1xf32>
    %cst_2 = arith.constant 9.99999974E-6 : f32
    %6 = vector.broadcast %cst_2 : f32 to vector<8x1xf32>
    %7 = arith.addf %5, %6 : vector<8x1xf32>
    %8 = math.rsqrt %7 : vector<8x1xf32>
    %9 = vector.broadcast %8 : vector<8x1xf32> to vector<8x128xf32>
    %10 = arith.mulf %0, %9 : vector<8x128xf32>
    %c0_3 = arith.constant 0 : index
    %c0_4 = arith.constant 0 : index
    %11 = vector.load %arg2[%c0_3, %c0_4] : memref<1x128xf32, #tpu.memory_space<vmem>>, vector<1x128xf32>
    %12 = vector.broadcast %11 : vector<1x128xf32> to vector<8x128xf32>
    %13 = arith.mulf %10, %12 : vector<8x128xf32>
    %14 = arith.truncf %13 : vector<8x128xf32> to vector<8x128xbf16>
    %c0_5 = arith.constant 0 : index
    %c0_6 = arith.constant 0 : index
    %15 = vector.load %arg3[%c0_5, %c0_6] : memref<128x648xbf16, #tpu.memory_space<vmem>>, vector<128x648xbf16>
    %cst_7 = arith.constant dense<0.000000e+00> : vector<8x648xf32>
    %16 = tpu.matmul %14, %15, %cst_7 {dimension_numbers = #tpu.dot_dimension_numbers<[1], [0], [0], [1], [0, 0, 1, 1], [], []>} : vector<8x128xbf16>, vector<128x648xbf16>, vector<8x648xf32> -> vector<8x648xf32>
    %17 = arith.truncf %16 : vector<8x648xf32> to vector<8x648xbf16>
    %c0_8 = arith.constant 0 : index
    %c0_9 = arith.constant 0 : index
    %18 = vector.load %arg4[%c0_8, %c0_9] : memref<8x648xbf16, #tpu.memory_space<vmem>>, vector<8x648xbf16>
    tpu.vector_store %arg4[%c0_8, %c0_9], %17 {strides = array<i32>} : memref<8x648xbf16, #tpu.memory_space<vmem>>, vector<8x648xbf16>,
    return
  }
  func.func @transform_0(%arg0: i32) -> (i32, i32) {
    %c0_i32 = arith.constant 0 : i32
    %c0_i32_0 = arith.constant 0 : i32
    return %arg0, %c0_i32 : i32, i32
  }
  func.func @transform_1(%arg0: i32) -> (i32, i32) {
    %c0_i32 = arith.constant 0 : i32
    %c0_i32_0 = arith.constant 0 : i32
    %c0_i32_1 = arith.constant 0 : i32
    return %c0_i32, %c0_i32_0 : i32, i32
  }
  func.func @transform_2(%arg0: i32) -> (i32, i32) {
    %c0_i32 = arith.constant 0 : i32
    %c0_i32_0 = arith.constant 0 : i32
    %c0_i32_1 = arith.constant 0 : i32
    return %c0_i32, %c0_i32_0 : i32, i32
  }
  func.func @transform_3(%arg0: i32) -> (i32, i32) {
    %c0_i32 = arith.constant 0 : i32
    %c0_i32_0 = arith.constant 0 : i32
    return %arg0, %c0_i32 : i32, i32
  }
}

</mosaic_0001>

<bundles_post_ra>
// kernel: tpu_custom_call.1
= control target key start
LH: loop header
LB: loop body
LE: loop exit
PB: predicated region body
PF: predicated region fallthrough
CT: control target
= control target key end

     0   :  { %s1040_s0 = inlined_call_operand.vmem [shape: f32[8,128], index: 0, kind: input, shape index: {}]   ;;  %s1041_s1 = inlined_call_operand.vmem [shape: f32[1,128], index: 1, kind: input, shape index: {}]   ;;  %s1042_s2 = inlined_call_operand.vmem [shape: bf16[128,648], index: 2, kind: input, shape index: {}]   ;;  %s1043_s3 = inlined_call_operand.hbm [shape: bf16[8,648], index: 3, kind: output, shape index: {}]  }
   0x1   :  { %v734_v0 = vld [vmem:[%s1040_s0] sm:$0xff]  ;;  %v606_v1 = vld [vmem:[%s1042_s2 + $0x150] sm:$0xf]  ;;  %v673_v2 = vld [vmem:[%s1042_s2 + $0x164] sm:$0xf0] }
   0x2   :  { %v16_v3 = vmul.f32 %v734_v0, %v734_v0  ;;  %v607_v4 = vor.u32 %v673_v2, %v606_v1  ;;  %v670_v5 = vld [vmem:[%s1042_s2 + $0x154] sm:$0xf]  ;;  %v608_v6 = vld [vmem:[%s1042_s2 + $0x168] sm:$0xf0]  ;;  %v582_v7 = vld [vmem:[%s1042_s2 + $0x120] sm:$0xf] }
   0x3   :  { %v611_v8 = vor.u32 %v670_v5, %v608_v6  ;;  %v667_v9 = vld [vmem:[%s1042_s2 + $0x134] sm:$0xf0]  ;;  %v664_v10 = vld [vmem:[%s1042_s2 + $0x124] sm:$0xf]  ;;  %v584_v11 = vld [vmem:[%s1042_s2 + $0x138] sm:$0xf0] }
   0x4   :  { %17 = vadd.xlane.f32.xlu0 %v16_v3  ;;  %333 = vmatpush.bf16.msra.mxu0 %v607_v4  ;;  %v583_v12 = vor.u32 %v667_v9, %v582_v7  ;;  %v587_v13 = vor.u32 %v664_v10, %v584_v11  ;;  %v558_v14 = vld [vmem:[%s1042_s2 + $0xf0] sm:$0xf]  ;;  %v661_v15 = vld [vmem:[%s1042_s2 + $0x104] sm:$0xf0]  ;;  %v658_v16 = vld [vmem:[%s1042_s2 + $0xf4] sm:$0xf] }
   0x5   :  { %346 = vmatpush.bf16.msra.mxu1 %v611_v8  ;;  %v560_v17 = vld [vmem:[%s1042_s2 + $0x108] sm:$0xf0]  ;;  %v614_v18 = vld [vmem:[%s1042_s2 + $0x158] sm:$0xf]  ;;  %v674_v19 = vld [vmem:[%s1042_s2 + $0x16c] sm:$0xf0]  ;;  %v559_v22 = vor.u32 %v661_v15, %v558_v14 }
   0x6   :  { %v671_v20 = vld [vmem:[%s1042_s2 + $0x15c] sm:$0xf]  ;;  %v616_v21 = vld [vmem:[%s1042_s2 + $0x170] sm:$0xf0]  ;;  %v615_v23 = vor.u32 %v674_v19, %v614_v18 }
   0x7   :  { %v619_v24 = vor.u32 %v671_v20, %v616_v21 }
   0x8   :  { %334 = vmatpush.bf16.msra.mxu0 %v583_v12 }
   0x9   :  { %8 = vsyncpa [#allocation3], 0  ;;  %347 = vmatpush.bf16.msra.mxu1 %v587_v13  ;;  %v563_v25 = vor.u32 %v658_v16, %v560_v17  ;;  %v534_v26 = vld [vmem:[%s1042_s2 + $0xc0] sm:$0xf]  ;;  %v655_v27 = vld [vmem:[%s1042_s2 + $0xd4] sm:$0xf0]  ;;  %359 = vmatpush.bf16.msra.mxu2 %v615_v23 }
   0xa   :  { %v652_v28 = vld [vmem:[%s1042_s2 + $0xc4] sm:$0xf]  ;;  %v536_v29 = vld [vmem:[%s1042_s2 + $0xd8] sm:$0xf0]  ;;  %372 = vmatpush.bf16.msra.mxu3 %v619_v24  ;;  %v535_v30 = vor.u32 %v655_v27, %v534_v26  ;;  %v510_v32 = vld [vmem:[%s1042_s2 + $0x90] sm:$0xf] }
   0xb   :  { %v539_v31 = vor.u32 %v652_v28, %v536_v29  ;;  %v649_v33 = vld [vmem:[%s1042_s2 + $0xa4] sm:$0xf0]  ;;  %v646_v34 = vld [vmem:[%s1042_s2 + $0x94] sm:$0xf]  ;;  %v512_v36 = vld [vmem:[%s1042_s2 + $0xa8] sm:$0xf0] }
   0xc   :  { %335 = vmatpush.bf16.msra.mxu0 %v559_v22  ;;  %v511_v35 = vor.u32 %v649_v33, %v510_v32  ;;  %v590_v37 = vld [vmem:[%s1042_s2 + $0x128] sm:$0xf]  ;;  %v668_v38 = vld [vmem:[%s1042_s2 + $0x13c] sm:$0xf0]  ;;  %v515_v39 = vor.u32 %v646_v34, %v512_v36  ;;  %v665_v41 = vld [vmem:[%s1042_s2 + $0x12c] sm:$0xf] }
   0xd   :  { %348 = vmatpush.bf16.msra.mxu1 %v563_v25  ;;  %v591_v40 = vor.u32 %v668_v38, %v590_v37  ;;  %v592_v42 = vld [vmem:[%s1042_s2 + $0x140] sm:$0xf0]  ;;  %v486_v44 = vld [vmem:[%s1042_s2 + $0x60] sm:$0xf]  ;;  %v643_v45 = vld [vmem:[%s1042_s2 + $0x74] sm:$0xf0] }
   0xe   :  { %v595_v43 = vor.u32 %v665_v41, %v592_v42  ;;  %v640_v46 = vld [vmem:[%s1042_s2 + $0x64] sm:$0xf]  ;;  %v487_v47 = vor.u32 %v643_v45, %v486_v44  ;;  %v488_v48 = vld [vmem:[%s1042_s2 + $0x78] sm:$0xf0]  ;;  %v566_v49 = vld [vmem:[%s1042_s2 + $0xf8] sm:$0xf] }
   0xf   :  { %360 = vmatpush.bf16.msra.mxu2 %v591_v40  ;;  %v662_v50 = vld [vmem:[%s1042_s2 + $0x10c] sm:$0xf0]  ;;  %v491_v51 = vor.u32 %v640_v46, %v488_v48  ;;  %v659_v53 = vld [vmem:[%s1042_s2 + $0xfc] sm:$0xf]  ;;  %v568_v54 = vld [vmem:[%s1042_s2 + $0x110] sm:$0xf0] }
  0x10   :  { %336 = vmatpush.bf16.msra.mxu0 %v535_v30  ;;  %373 = vmatpush.bf16.msra.mxu3 %v595_v43  ;;  %v567_v52 = vor.u32 %v662_v50, %v566_v49  ;;  %v709_v55 = vmov 128.0   ;;  %v571_v56 = vor.u32 %v659_v53, %v568_v54  ;;  %v462_v57 = vld [vmem:[%s1042_s2 + $0x30] sm:$0xf]  ;;  %v637_v58 = vld [vmem:[%s1042_s2 + $0x44] sm:$0xf0]  ;;  %vm416_vm4 = vcmask 1043456  }
  0x11   :  { %349 = vmatpush.bf16.msra.mxu1 %v539_v31  ;;  %679 = vrcp.f32 %v709_v55  ;;  %v634_v59 = vld [vmem:[%s1042_s2 + $0x34] sm:$0xf]  ;;  %v463_v60 = vor.u32 %v637_v58, %v462_v57  ;;  %v464_v61 = vld [vmem:[%s1042_s2 + $0x48] sm:$0xf0]  ;;  %v542_v62 = vld [vmem:[%s1042_s2 + $0xc8] sm:$0xf] }
  0x12   :  { %v656_v63 = vld [vmem:[%s1042_s2 + $0xdc] sm:$0xf0]  ;;  %v467_v1 = vor.u32 %v634_v59, %v464_v61  ;;  %v653_v3 = vld [vmem:[%s1042_s2 + $0xcc] sm:$0xf]  ;;  %v544_v4 = vld [vmem:[%s1042_s2 + $0xe0] sm:$0xf0] }
  0x13   :  { %361 = vmatpush.bf16.msra.mxu2 %v567_v52  ;;  %v543_v2 = vor.u32 %v656_v63, %v542_v62  ;;  %v547_v5 = vor.u32 %v653_v3, %v544_v4  ;;  %v438_v6 = vld [vmem:[%s1042_s2] sm:$0xf]  ;;  %v631_v7 = vld [vmem:[%s1042_s2 + $0x14] sm:$0xf0]  ;;  %v628_v8 = vld [vmem:[%s1042_s2 + $0x4] sm:$0xf] }
  0x14   :  { %337 = vmatpush.bf16.msra.mxu0 %v511_v35  ;;  %374 = vmatpush.bf16.msra.mxu3 %v571_v56  ;;  %v439_v10 = vor.u32 %v631_v7, %v438_v6  ;;  %v440_v11 = vld [vmem:[%s1042_s2 + $0x18] sm:$0xf0]  ;;  %v518_v12 = vld [vmem:[%s1042_s2 + $0x98] sm:$0xf]  ;;  %v650_v13 = vld [vmem:[%s1042_s2 + $0xac] sm:$0xf0] }
  0x15   :  { %350 = vmatpush.bf16.msra.mxu1 %v515_v39  ;;  %v443_v14 = vor.u32 %v628_v8, %v440_v11  ;;  %v519_v15 = vor.u32 %v650_v13, %v518_v12  ;;  %v647_v16 = vld [vmem:[%s1042_s2 + $0x9c] sm:$0xf]  ;;  %v520_v17 = vld [vmem:[%s1042_s2 + $0xb0] sm:$0xf0]  ;;  %v622_v18 = vld [vmem:[%s1042_s2 + $0x160] sm:$0xf] }
  0x16   :  { %v523_v19 = vor.u32 %v647_v16, %v520_v17  ;;  %v675_v20 = vld [vmem:[%s1042_s2 + $0x174] sm:$0xf0]  ;;  %v672_v21 = vld [vmem:[%s1042_s2 + $0x164] sm:$0xf]  ;;  %v624_v22 = vld [vmem:[%s1042_s2 + $0x178] sm:$0xf0] }
  0x17   :  { %362 = vmatpush.bf16.msra.mxu2 %v543_v2  ;;  %v879_v9 = vpop.eup %679  ;;  %v623_v24 = vor.u32 %v675_v20, %v622_v18  ;;  %v627_v25 = vor.u32 %v672_v21, %v624_v22  ;;  %v494_v26 = vld [vmem:[%s1042_s2 + $0x68] sm:$0xf]  ;;  %v644_v27 = vld [vmem:[%s1042_s2 + $0x7c] sm:$0xf0]  ;;  %v641_v28 = vld [vmem:[%s1042_s2 + $0x6c] sm:$0xf] }
  0x18   :  { %338 = vmatpush.bf16.msra.mxu0 %v487_v47  ;;  %375 = vmatpush.bf16.msra.mxu3 %v547_v5  ;;  %v20_v23 = vmul.f32 128.0, %v879_v9  ;;  %v495_v29 = vor.u32 %v644_v27, %v494_v26  ;;  %v496_v30 = vld [vmem:[%s1042_s2 + $0x80] sm:$0xf0]  ;;  %v598_v31 = vld [vmem:[%s1042_s2 + $0x130] sm:$0xf]  ;;  %vm24_vm0 = vweird.f32 %v879_v9  ;;  %vm417_vm5 = vcmask 64516  }
  0x19   :  { %351 = vmatpush.bf16.msra.mxu1 %v491_v51  ;;  %v669_v32 = vld [vmem:[%s1042_s2 + $0x144] sm:$0xf0]  ;;  %v499_v33 = vor.u32 %v641_v28, %v496_v30  ;;  %v666_v35 = vld [vmem:[%s1042_s2 + $0x134] sm:$0xf]  ;;  %v600_v36 = vld [vmem:[%s1042_s2 + $0x148] sm:$0xf0] }
  0x1a   :  { %v599_v34 = vor.u32 %v669_v32, %v598_v31  ;;  %v21_v37 = vsub.f32 1.0, %v20_v23  ;;  %v603_v38 = vor.u32 %v666_v35, %v600_v36  ;;  %v470_v39 = vld [vmem:[%s1042_s2 + $0x38] sm:$0xf]  ;;  %v638_v40 = vld [vmem:[%s1042_s2 + $0x4c] sm:$0xf0]  ;;  %s427_s14 = sshll.u32 %s1043_s3, 4  ;;  %vm418_vm6 = vmor %vm417_vm5, %vm416_vm4  ;;  %s428_s14 = int_to_ptr.hbm [resolvable:$true] %s427_s14 }
  0x1b   :  { %363 = vmatpush.bf16.msra.mxu2 %v519_v15  ;;  %v635_v41 = vld [vmem:[%s1042_s2 + $0x3c] sm:$0xf]  ;;  %v471_v42 = vor.u32 %v638_v40, %v470_v39  ;;  %v472_v43 = vld [vmem:[%s1042_s2 + $0x50] sm:$0xf0]  ;;  %v574_v44 = vld [vmem:[%s1042_s2 + $0x100] sm:$0xf] }
  0x1c   :  { %339 = vmatpush.bf16.msra.mxu0 %v463_v60  ;;  %376 = vmatpush.bf16.msra.mxu3 %v523_v19  ;;  %v663_v45 = vld [vmem:[%s1042_s2 + $0x114] sm:$0xf0]  ;;  %v475_v46 = vor.u32 %v635_v41, %v472_v43  ;;  %v660_v48 = vld [vmem:[%s1042_s2 + $0x104] sm:$0xf]  ;;  %v576_v49 = vld [vmem:[%s1042_s2 + $0x118] sm:$0xf0]  ;;  %v22_v50 = vmul.f32 %v879_v9, %v21_v37 }
  0x1d   :  { %352 = vmatpush.bf16.msra.mxu1 %v467_v1  ;;  %v575_v47 = vor.u32 %v663_v45, %v574_v44  ;;  %v579_v51 = vor.u32 %v660_v48, %v576_v49  ;;  %v446_v52 = vld [vmem:[%s1042_s2 + $0x8] sm:$0xf]  ;;  %v632_v53 = vld [vmem:[%s1042_s2 + $0x1c] sm:$0xf0]  ;;  %v629_v55 = vld [vmem:[%s1042_s2 + $0xc] sm:$0xf] }
  0x1e   :  { %v447_v54 = vor.u32 %v632_v53, %v446_v52  ;;  %v448_v56 = vld [vmem:[%s1042_s2 + $0x20] sm:$0xf0]  ;;  %v550_v57 = vld [vmem:[%s1042_s2 + $0xd0] sm:$0xf]  ;;  %v657_v59 = vld [vmem:[%s1042_s2 + $0xe4] sm:$0xf0]  ;;  %v23_v62 = vadd.f32 %v879_v9, %v22_v50 }
  0x1f   :  { %364 = vmatpush.bf16.msra.mxu2 %v495_v29  ;;  %v451_v58 = vor.u32 %v629_v55, %v448_v56  ;;  %v654_v60 = vld [vmem:[%s1042_s2 + $0xd4] sm:$0xf]  ;;  %v552_v61 = vld [vmem:[%s1042_s2 + $0xe8] sm:$0xf0]  ;;  %v551_v63 = vor.u32 %v657_v59, %v550_v57  ;;  %v526_v2 = vld [vmem:[%s1042_s2 + $0xa0] sm:$0xf] }
  0x20   :  { %340 = vmatpush.bf16.msra.mxu0 %v439_v10  ;;  %377 = vmatpush.bf16.msra.mxu3 %v499_v33  ;;  %v555_v1 = vor.u32 %v654_v60, %v552_v61  ;;  %v651_v3 = vld [vmem:[%s1042_s2 + $0xb4] sm:$0xf0]  ;;  %v648_v4 = vld [vmem:[%s1042_s2 + $0xa4] sm:$0xf]  ;;  %v528_v6 = vld [vmem:[%s1042_s2 + $0xb8] sm:$0xf0]  ;;  %v25_v7 = vsel %vm24_vm0, %v879_v9, %v23_v62 }
  0x21   :  { %353 = vmatpush.bf16.msra.mxu1 %v443_v14  ;;  %v527_v5 = vor.u32 %v651_v3, %v526_v2  ;;  %v531_v8 = vor.u32 %v648_v4, %v528_v6  ;;  %v502_v10 = vld [vmem:[%s1042_s2 + $0x70] sm:$0xf]  ;;  %v645_v11 = vld [vmem:[%s1042_s2 + $0x84] sm:$0xf0]  ;;  %v642_v12 = vld [vmem:[%s1042_s2 + $0x74] sm:$0xf] }
  0x22   :  { %v504_v13 = vld [vmem:[%s1042_s2 + $0x88] sm:$0xf0]  ;;  %v503_v9 = vor.u32 %v645_v11, %v502_v10  ;;  %v478_v16 = vld [vmem:[%s1042_s2 + $0x40] sm:$0xf]  ;;  %v639_v18 = vld [vmem:[%s1042_s2 + $0x54] sm:$0xf0] }
  0x23   :  { %365 = vmatpush.bf16.msra.mxu2 %v471_v42  ;;  %v507_v15 = vor.u32 %v642_v12, %v504_v13  ;;  %v636_v19 = vld [vmem:[%s1042_s2 + $0x44] sm:$0xf]  ;;  %v480_v20 = vld [vmem:[%s1042_s2 + $0x58] sm:$0xf0]  ;;  %v479_v22 = vor.u32 %v639_v18, %v478_v16  ;;  %v630_v26 = vld [vmem:[%s1042_s2 + $0x14] sm:$0xf] }
  0x24   :  { %385 = vmatpush.bf16.msrb.mxu0 %v623_v24  ;;  %378 = vmatpush.bf16.msra.mxu3 %v475_v46  ;;  %v483_v23 = vor.u32 %v636_v19, %v480_v20  ;;  %v454_v24 = vld [vmem:[%s1042_s2 + $0x10] sm:$0xf]  ;;  %v456_v27 = vld [vmem:[%s1042_s2 + $0x28] sm:$0xf0]  ;;  %v678_v36 = vld [vmem:[%s1041_s1] ss:$0 sm:$0xff] }
  0x25   :  { %398 = vmatpush.bf16.msrb.mxu1 %v627_v25  ;;  %v633_v25 = vld [vmem:[%s1042_s2 + $0x24] sm:$0xf0]  ;;  %v459_v29 = vor.u32 %v630_v26, %v456_v27  ;;  %s710_s1 = smov [#allocation2]  }
  0x26   :  { %v455_v28 = vor.u32 %v633_v25, %v454_v24  ;;  %s425_s2 = sshll.u32 %s710_s1, 4  ;;  %s426_s2 = int_to_ptr.vmem [resolvable:$true] %s425_s2 }
  0x27   :  { %366 = vmatpush.bf16.msra.mxu2 %v447_v54 }
  0x28   :  { %386 = vmatpush.bf16.msrb.mxu0 %v599_v34  ;;  %379 = vmatpush.bf16.msra.mxu3 %v451_v58 }
  0x29   :  { %399 = vmatpush.bf16.msrb.mxu1 %v603_v38 }
  0x2c   :  { %387 = vmatpush.bf16.msrb.mxu0 %v575_v47 }
  0x2d   :  { %400 = vmatpush.bf16.msrb.mxu1 %v579_v51 }
  0x30   :  { %388 = vmatpush.bf16.msrb.mxu0 %v551_v63 }
  0x31   :  { %401 = vmatpush.bf16.msrb.mxu1 %v555_v1 }
  0x34   :  { %389 = vmatpush.bf16.msrb.mxu0 %v527_v5 }
  0x35   :  { %402 = vmatpush.bf16.msrb.mxu1 %v531_v8 }
  0x38   :  { %390 = vmatpush.bf16.msrb.mxu0 %v503_v9 }
  0x39   :  { %403 = vmatpush.bf16.msrb.mxu1 %v507_v15 }
  0x3c   :  { %391 = vmatpush.bf16.msrb.mxu0 %v479_v22 }
  0x3d   :  { %404 = vmatpush.bf16.msrb.mxu1 %v483_v23 }
  0x40   :  { %392 = vmatpush.bf16.msrb.mxu0 %v455_v28 }
  0x41   :  { %405 = vmatpush.bf16.msrb.mxu1 %v459_v29 }
  0x77   :  { %v18_v14 = vpop.xlane.xlu0 %17 }
  0x78   :  { %v26_v17 = vmul.f32 %v25_v7, %v18_v14 }
  0x7a   :  { %v27_v21 = vadd.f32 1e-05, %v26_v17 }
  0x7c   :  { %681 = vrsqrt.f32 %v27_v21  ;;  %vm34_vm2 = vweird.f32 %v27_v21 }
  0x82   :  { %v682_v30 = vpop.eup %681 }
  0x83   :  { %v29_v31 = vmul.f32 %v682_v30, %v27_v21  ;;  %vm35_vm1 = vweird.f32 %v682_v30 }
  0x84   :  { %vm36_vm3 = vmor %vm34_vm2, %vm35_vm1 }
  0x85   :  { %v30_v32 = vmul.f32 %v682_v30, %v29_v31 }
  0x87   :  { %v31_v33 = vmul.f32 0.5, %v30_v32 }
  0x89   :  { %v32_v34 = vsub.f32 1.5, %v31_v33 }
  0x8b   :  { %v33_v35 = vmul.f32 %v682_v30, %v32_v34 }
  0x8d   :  { %v37_v37 = vsel %vm36_vm3, %v682_v30, %v33_v35 }
  0x8e   :  { %v38_v38 = vmul.f32 %v37_v37, %v734_v0 }
  0x90   :  { %v43_v39 = vmul.f32 %v678_v36, %v38_v38 }
  0x92   :  { %v44_v40 = vpack.c.bf16 %v43_v39, %v43_v39 }
  0x94   :  { %341 = vmatmul.bf16.vlgmr.msra.gmra.mxu0 %v44_v40  ;;  %354 = vmatmul.bf16.vlgmr.msra.gmra.mxu1 %v44_v40 }
  0x95   :  { %367 = vmatmul.bf16.vlgmr.msra.gmra.mxu2 %v44_v40  ;;  %380 = vmatmul.bf16.vlgmr.msra.gmra.mxu3 %v44_v40 }
  0xa4   :  { %393 = vmatmul.bf16.vlgmr.msrb.gmra.mxu0 %v44_v40  ;;  %406 = vmatmul.bf16.vlgmr.msrb.gmra.mxu1 %v44_v40 }
 0x111   :  { %v342_v41 = vpop.f32.mrf.mxu0  ;;  %v355_v42 = vpop.f32.mrf.mxu1 }
 0x112   :  { %v411_v43 = vpack.c.bf16 %v355_v42, %v342_v41 }
 0x114   :  { %414 = vst [vmem:[#allocation2] sm:$0xff] %v411_v43 }
 0x118   :  { %v368_v44 = vpop.f32.mrf.mxu2  ;;  %v381_v45 = vpop.f32.mrf.mxu3 }
 0x119   :  { %v412_v46 = vpack.c.bf16 %v381_v45, %v368_v44  ;;  %v344_v47 = vpop.f32.mrf.mxu0  ;;  %v357_v48 = vpop.f32.mrf.mxu1 }
 0x11b   :  { %415 = vst [vmem:[#allocation2 + $0x8] sm:$0xff] %v412_v46 }
 0x120   :  { %v370_v0 = vpop.f32.mrf.mxu2  ;;  %v383_v49 = vpop.f32.mrf.mxu3 }
 0x121   :  { %v394_v50 = vpop.f32.mrf.mxu0  ;;  %v407_v51 = vpop.f32.mrf.mxu1 }
 0x122   :  { %v413_v52 = vpack.c.bf16 %v407_v51, %v394_v50 }
 0x124   :  { %419 = vst.msk [vmem:[#allocation2 + $0x10] sm:$0xff] %vm418_vm6, %v413_v52 }
 0x125   :  { %430 = dma.vmem_to_hbm [thread:$0]  %s426_s2, 384, %s428_s14, [#allocation3]  }
 0x129   :  { %v396_v53 = vpop.f32.mrf.mxu0  ;;  %v409_v54 = vpop.f32.mrf.mxu1 }
 0x12a   :  { %707 = dma.done.wait [#allocation3], 384  }
 0x12b   :  { %708 = vsyncadd [#allocation3], 4294966912 }
 0x12c   :  { %435 = vsyncpa [#allocation3], 1 }

</bundles_post_ra>
